<compile_context>
chip_gen: v5e
topology: v5e:2x2
jax: 0.10.0
libtpu: 0.0.40
codegen_flags: <defaults>
</compile_context>

<pallas_src>
from functools import partial

import jax
import jax.numpy as jnp
from jax.experimental import pallas as pl
from jax.experimental.pallas import tpu as pltpu

# Exact f32 matmuls everywhere so the kernel and the pure-JAX reference agree.
jax.config.update("jax_default_matmul_precision", "highest")


def _causal_regulator_kernel(cmu_ref, kc_ref, p_ref, out_ref, dcm_ref, *,
                             alpha, inv_temperature, batch, n_knowledge,
                             hidden_dim):
    B, K, H = batch, n_knowledge, hidden_dim
    f32 = jnp.float32

    # ---- unpack the two packed small-operand slabs (static, aligned slices) -
    cm = cmu_ref[0:K, :]                 # (K, K) causal_matrix parameter
    u = cmu_ref[K:2 * K, :]              # (K, K) U ~ Uniform[0, 1)
    w1a = p_ref[0:H, :]                  # (H, H) first half of Linear(2H -> H)
    w1b = p_ref[H:2 * H, :]              # (H, H) second half
    w2 = p_ref[2 * H:3 * H, :]           # (H, H) Linear(H -> H)
    b1 = p_ref[3 * H:3 * H + 1, :]       # (1, H)
    b2 = p_ref[3 * H + 8:3 * H + 9, :]   # (1, H)

    # ---- matmuls that do NOT depend on the softmax chain --------------------
    kc_flat = kc_ref[...].reshape(B * K, H)          # layout-free reshape
    kc_w1a = jnp.dot(kc_flat, w1a, preferred_element_type=f32)
    kc_w1b = jnp.dot(kc_flat, w1b, preferred_element_type=f32)

    # ---- Gumbel-noised softmax over the causal matrix -----------------------
    noise = -jnp.log(-jnp.log(u + 1e-10) + 1e-10)
    z = (cm + noise) * inv_temperature
    z = z - jnp.max(z, axis=-1, keepdims=True)
    e = jnp.exp(z)
    dcm = e / jnp.sum(e, axis=-1, keepdims=True)     # exact normalization
    dcm_ref[...] = dcm                               # written before the MLP

    # ---- causal-context contribution in ONE dcm-dependent MXU push ----------
    # ctx = dcm @ kc per batch element; (blockdiag(dcm) @ kc) @ W1b
    #     == blockdiag(dcm) @ (kc @ W1b), so only this single matmul (plus the
    # final W2 matmul) sits on the PRNG->softmax critical path.
    if B == 1:
        bd = dcm
    else:
        zero_kk = jnp.zeros((K, K), f32)
        rows = [jnp.concatenate([dcm if j == b else zero_kk for j in range(B)],
                                axis=1) for b in range(B)]
        bd = jnp.concatenate(rows, axis=0)           # (B*K, B*K) block diagonal
    ctx_w1b = jnp.dot(bd, kc_w1b, preferred_element_type=f32)

    # ---- knowledge_regulate MLP (Dropout = identity in eval mode) -----------
    h = jnp.maximum(kc_w1a + ctx_w1b + b1, 0.0)
    reg = jnp.dot(h, w2, preferred_element_type=f32) + b2

    if alpha == 1.0:                                 # trace-time special case
        out_flat = reg
    elif alpha == 0.0:
        out_flat = kc_flat
    else:
        out_flat = (1.0 - alpha) * kc_flat + alpha * reg
    out_ref[...] = out_flat.reshape(B, K, H)


def causal_regulator_forward(kc_embeddings, params, noise_key, *,
                             alpha=1.0, temperature=0.3):
    B, K, H = kc_embeddings.shape
    f32 = jnp.float32
    kc = kc_embeddings.astype(f32)

    # Uniform noise generated outside the kernel (torch.rand_like equivalent).
    u = jax.random.uniform(noise_key, (K, K), dtype=f32)
    cm_u = jnp.concatenate([params["causal_matrix"].astype(f32), u], axis=0)

    # Pack the five tiny parameter tensors into one slab -> one input DMA.
    # Rows: [0,H) w1a | [H,2H) w1b | [2H,3H) w2 | 3H b1 | pad | 3H+8 b2 | pad.
    w1 = params["w1"].astype(f32)                    # (2H, H), stored (in, out)
    pad = jnp.zeros((7, H), f32)
    p_slab = jnp.concatenate(
        [w1[:H], w1[H:], params["w2"].astype(f32),
         params["b1"].reshape(1, H).astype(f32), pad,
         params["b2"].reshape(1, H).astype(f32), pad], axis=0)   # (3H+16, H)

    flops = 2 * B * K * H * (B * K + 3 * H)
    bytes_accessed = 4 * (cm_u.size + kc.size + p_slab.size + B * K * H + K * K)

    def vmem():
        return pl.BlockSpec(memory_space=pltpu.MemorySpace.VMEM)

    out, dcm = pl.pallas_call(
        partial(_causal_regulator_kernel,
                alpha=float(alpha),
                inv_temperature=float(1.0 / temperature),
                batch=B, n_knowledge=K, hidden_dim=H),
        out_shape=(jax.ShapeDtypeStruct((B, K, H), f32),
                   jax.ShapeDtypeStruct((K, K), f32)),
        in_specs=[vmem(),   # cm_u  : causal_matrix stacked with uniform noise
                  vmem(),   # kc_embeddings
                  vmem()],  # packed parameter slab
        out_specs=(vmem(), vmem()),
        cost_estimate=pl.CostEstimate(flops=flops,
                                      transcendentals=3 * K * K,
                                      bytes_accessed=bytes_accessed),
    )(cm_u, kc, p_slab)
    return out, dcm


def reference_forward(kc, params, noise_key, *, alpha=1.0, temperature=0.3):
    """Pure-JAX reference mirroring the PyTorch module (same noise key)."""
    _, K, _ = kc.shape
    u = jax.random.uniform(noise_key, (K, K), dtype=jnp.float32)
    noise = -jnp.log(-jnp.log(u + 1e-10) + 1e-10)
    dcm = jax.nn.softmax((params["causal_matrix"] + noise) / temperature,
                         axis=-1)
    ctx = jnp.einsum("kj,bjh->bkh", dcm, kc)
    cat = jnp.concatenate([kc, ctx], axis=-1)
    h = jnp.maximum(cat @ params["w1"] + params["b1"], 0.0)
    reg = h @ params["w2"] + params["b2"]
    final = (1.0 - alpha) * kc + alpha * reg
    return final, dcm


def init_params(key, n_knowledge, hidden_dim):
    """Deterministic parameter init mirroring nn.Linear default bounds."""
    k1, k2, k3, k4 = jax.random.split(key, 4)
    bound1 = 1.0 / (2 * hidden_dim) ** 0.5
    bound2 = 1.0 / hidden_dim ** 0.5
    return {
        "causal_matrix": jnp.zeros((n_knowledge, n_knowledge), jnp.float32),
        # stored as (in, out): first Linear is (2H -> H), second is (H -> H)
        "w1": jax.random.uniform(k1, (2 * hidden_dim, hidden_dim),
                                 minval=-bound1, maxval=bound1,
                                 dtype=jnp.float32),
        "b1": jax.random.uniform(k2, (hidden_dim,),
                                 minval=-bound1, maxval=bound1,
                                 dtype=jnp.float32),
        "w2": jax.random.uniform(k3, (hidden_dim, hidden_dim),
                                 minval=-bound2, maxval=bound2,
                                 dtype=jnp.float32),
        "b2": jax.random.uniform(k4, (hidden_dim,),
                                 minval=-bound2, maxval=bound2,
                                 dtype=jnp.float32),
    }


if __name__ == "__main__":
    B, K, H = 2, 16, 32          # batch, n_knowledge, hidden_dim
    root = jax.random.PRNGKey(0)
    kp, kx, kn = jax.random.split(root, 3)

    params = init_params(kp, K, H)
    kc_embeddings = jax.random.normal(kx, (B, K, H), dtype=jnp.float32)

    final_embeds, dynamic_causal_matrix = causal_regulator_forward(
        kc_embeddings, params, kn, alpha=1.0, temperature=0.3)
    jax.block_until_ready((final_embeds, dynamic_causal_matrix))

    assert final_embeds.shape == (B, K, H)
    assert dynamic_causal_matrix.shape == (K, K)
    assert bool(jnp.all(jnp.isfinite(final_embeds)))
    # exact softmax normalization -> rows sum to 1
    assert bool(jnp.allclose(jnp.sum(dynamic_causal_matrix, axis=-1), 1.0,
                             atol=1e-3))

    # Compare against a pure-JAX reference using the identical noise.
    ref_final, ref_dcm = reference_forward(kc_embeddings, params, kn,
                                           alpha=1.0, temperature=0.3)
    assert bool(jnp.allclose(dynamic_causal_matrix, ref_dcm,
                             rtol=2e-2, atol=2e-2))
    assert bool(jnp.allclose(final_embeds, ref_final, rtol=2e-2, atol=2e-2))
    print("KERNEL_OK")
</pallas_src>

<mosaic_0001>
module attributes {stable_mosaic.version = 11 : i64} {
  func.func @_causal_regulator_kernel(%arg0: memref<32x16xf32, #tpu.memory_space<vmem>>, %arg1: memref<2x16x32xf32, #tpu.memory_space<vmem>>, %arg2: memref<112x32xf32, #tpu.memory_space<vmem>>, %arg3: memref<2x16x32xf32, #tpu.memory_space<vmem>>, %arg4: memref<16x16xf32, #tpu.memory_space<vmem>>) attributes {dimension_semantics = [], scalar_prefetch = 0 : i64, scratch_operands = 0 : i64, tpu.core_type = #tpu.core_type<tc>} {
    %c0 = arith.constant 0 : index
    %c0_0 = arith.constant 0 : index
    %0 = vector.load %arg0[%c0, %c0_0] : memref<32x16xf32, #tpu.memory_space<vmem>>, vector<16x16xf32>
    %c16 = arith.constant 16 : index
    %c0_1 = arith.constant 0 : index
    %1 = vector.load %arg0[%c16, %c0_1] : memref<32x16xf32, #tpu.memory_space<vmem>>, vector<16x16xf32>
    %c0_2 = arith.constant 0 : index
    %c0_3 = arith.constant 0 : index
    %2 = vector.load %arg2[%c0_2, %c0_3] : memref<112x32xf32, #tpu.memory_space<vmem>>, vector<32x32xf32>
    %c32 = arith.constant 32 : index
    %c0_4 = arith.constant 0 : index
    %3 = vector.load %arg2[%c32, %c0_4] : memref<112x32xf32, #tpu.memory_space<vmem>>, vector<32x32xf32>
    %c64 = arith.constant 64 : index
    %c0_5 = arith.constant 0 : index
    %4 = vector.load %arg2[%c64, %c0_5] : memref<112x32xf32, #tpu.memory_space<vmem>>, vector<32x32xf32>
    %c96 = arith.constant 96 : index
    %c0_6 = arith.constant 0 : index
    %5 = vector.load %arg2[%c96, %c0_6] : memref<112x32xf32, #tpu.memory_space<vmem>>, vector<1x32xf32>
    %c104 = arith.constant 104 : index
    %c0_7 = arith.constant 0 : index
    %6 = vector.load %arg2[%c104, %c0_7] : memref<112x32xf32, #tpu.memory_space<vmem>>, vector<1x32xf32>
    %c0_8 = arith.constant 0 : index
    %c0_9 = arith.constant 0 : index
    %c0_10 = arith.constant 0 : index
    %7 = vector.load %arg1[%c0_8, %c0_9, %c0_10] : memref<2x16x32xf32, #tpu.memory_space<vmem>>, vector<2x16x32xf32>
    %8 = vector.shape_cast %7 : vector<2x16x32xf32> to vector<32x32xf32>
    %cst = arith.constant dense<0.000000e+00> : vector<32x32xf32>
    %9 = tpu.matmul %8, %2, %cst {dimension_numbers = #tpu.dot_dimension_numbers<[1], [0], [0], [1], [0, 0, 1, 1], [], []>, precision = #tpu.contract_precision<fp32>} : vector<32x32xf32>, vector<32x32xf32>, vector<32x32xf32> -> vector<32x32xf32>
    %cst_11 = arith.constant dense<0.000000e+00> : vector<32x32xf32>
    %10 = tpu.matmul %8, %3, %cst_11 {dimension_numbers = #tpu.dot_dimension_numbers<[1], [0], [0], [1], [0, 0, 1, 1], [], []>, precision = #tpu.contract_precision<fp32>} : vector<32x32xf32>, vector<32x32xf32>, vector<32x32xf32> -> vector<32x32xf32>
    %cst_12 = arith.constant 1.000000e-10 : f32
    %11 = vector.broadcast %cst_12 : f32 to vector<16x16xf32>
    %12 = arith.addf %1, %11 : vector<16x16xf32>
    %13 = math.log %12 : vector<16x16xf32>
    %cst_13 = arith.constant 0.000000e+00 : f32
    %14 = vector.broadcast %cst_13 : f32 to vector<16x16xf32>
    %15 = arith.subf %14, %13 : vector<16x16xf32>
    %cst_14 = arith.constant 1.000000e-10 : f32
    %16 = vector.broadcast %cst_14 : f32 to vector<16x16xf32>
    %17 = arith.addf %15, %16 : vector<16x16xf32>
    %18 = math.log %17 : vector<16x16xf32>
    %cst_15 = arith.constant 0.000000e+00 : f32
    %19 = vector.broadcast %cst_15 : f32 to vector<16x16xf32>
    %20 = arith.subf %19, %18 : vector<16x16xf32>
    %21 = arith.addf %0, %20 : vector<16x16xf32>
    %cst_16 = arith.constant 3.33333325 : f32
    %22 = vector.broadcast %cst_16 : f32 to vector<16x16xf32>
    %23 = arith.mulf %21, %22 : vector<16x16xf32>
    %cst_17 = arith.constant dense<0xFF800000> : vector<16xf32>
    %24 = vector.multi_reduction <maximumf>, %23, %cst_17 [1] : vector<16x16xf32> to vector<16xf32>
    %25 = vector.shape_cast %24 : vector<16xf32> to vector<16x1xf32>
    %26 = vector.broadcast %25 : vector<16x1xf32> to vector<16x16xf32>
    %27 = arith.subf %23, %26 : vector<16x16xf32>
    %28 = math.exp %27 : vector<16x16xf32>
    %cst_18 = arith.constant dense<0.000000e+00> : vector<16xf32>
    %29 = vector.multi_reduction <add>, %28, %cst_18 [1] : vector<16x16xf32> to vector<16xf32>
    %30 = vector.shape_cast %29 : vector<16xf32> to vector<16x1xf32>
    %31 = vector.broadcast %30 : vector<16x1xf32> to vector<16x16xf32>
    %32 = arith.divf %28, %31 : vector<16x16xf32>
    %c0_19 = arith.constant 0 : index
    %c0_20 = arith.constant 0 : index
    %33 = vector.load %arg4[%c0_19, %c0_20] : memref<16x16xf32, #tpu.memory_space<vmem>>, vector<16x16xf32>
    tpu.vector_store %arg4[%c0_19, %c0_20], %32 {strides = array<i32>} : memref<16x16xf32, #tpu.memory_space<vmem>>, vector<16x16xf32>,
    %cst_21 = arith.constant 0.000000e+00 : f32
    %34 = vector.broadcast %cst_21 : f32 to vector<16x16xf32>
    %35 = tpu.concatenate %32, %34 in 1 : vector<16x16xf32>, vector<16x16xf32> -> vector<16x32xf32>
    %36 = tpu.concatenate %34, %32 in 1 : vector<16x16xf32>, vector<16x16xf32> -> vector<16x32xf32>
    %37 = tpu.concatenate %35, %36 in 0 : vector<16x32xf32>, vector<16x32xf32> -> vector<32x32xf32>
    %cst_22 = arith.constant dense<0.000000e+00> : vector<32x32xf32>
    %38 = tpu.matmul %37, %10, %cst_22 {dimension_numbers = #tpu.dot_dimension_numbers<[1], [0], [0], [1], [0, 0, 1, 1], [], []>, precision = #tpu.contract_precision<fp32>} : vector<32x32xf32>, vector<32x32xf32>, vector<32x32xf32> -> vector<32x32xf32>
    %39 = arith.addf %9, %38 : vector<32x32xf32>
    %40 = vector.broadcast %5 : vector<1x32xf32> to vector<32x32xf32>
    %41 = arith.addf %39, %40 : vector<32x32xf32>
    %cst_23 = arith.constant 0.000000e+00 : f32
    %42 = vector.broadcast %cst_23 : f32 to vector<32x32xf32>
    %43 = arith.maximumf %41, %42 : vector<32x32xf32>
    %cst_24 = arith.constant dense<0.000000e+00> : vector<32x32xf32>
    %44 = tpu.matmul %43, %4, %cst_24 {dimension_numbers = #tpu.dot_dimension_numbers<[1], [0], [0], [1], [0, 0, 1, 1], [], []>, precision = #tpu.contract_precision<fp32>} : vector<32x32xf32>, vector<32x32xf32>, vector<32x32xf32> -> vector<32x32xf32>
    %45 = vector.broadcast %6 : vector<1x32xf32> to vector<32x32xf32>
    %46 = arith.addf %44, %45 : vector<32x32xf32>
    %47 = vector.shape_cast %46 : vector<32x32xf32> to vector<2x16x32xf32>
    %c0_25 = arith.constant 0 : index
    %c0_26 = arith.constant 0 : index
    %c0_27 = arith.constant 0 : index
    %48 = vector.load %arg3[%c0_25, %c0_26, %c0_27] : memref<2x16x32xf32, #tpu.memory_space<vmem>>, vector<2x16x32xf32>
    tpu.vector_store %arg3[%c0_25, %c0_26, %c0_27], %47 {strides = array<i32>} : memref<2x16x32xf32, #tpu.memory_space<vmem>>, vector<2x16x32xf32>,
    return
  }
}

</mosaic_0001>

<bundles_post_ra>
// kernel: tpu_custom_call.1
= control target key start
LH: loop header
LB: loop body
LE: loop exit
PB: predicated region body
PF: predicated region fallthrough
CT: control target
= control target key end

     0   :  { %10 = vsyncpa [#allocation3], 0  ;;  %s1752_s0 = inlined_call_operand.vmem [shape: f32[32,16], index: 0, kind: input, shape index: {}]   ;;  %s1753_s1 = inlined_call_operand.vmem [shape: f32[2,16,32], index: 1, kind: input, shape index: {}]   ;;  %s1754_s2 = inlined_call_operand.vmem [shape: f32[112,32], index: 2, kind: input, shape index: {}]   ;;  %s1755_s3 = inlined_call_operand.hbm [shape: f32[2,16,32], index: 3, kind: output, shape index: {0}]   ;;  %s1756_s4 = inlined_call_operand.hbm [shape: f32[16,16], index: 4, kind: output, shape index: {1}]  }
   0x1   :  { %v20_v0 = vld [vmem:[%s1752_s0 + $0x10] sm:$0xff]  ;;  %v21_v2 = vld [vmem:[%s1752_s0 + $0x18] sm:$0xff] }
   0x2   :  { %v331_v1 = vadd.f32 1e-10, %v20_v0  ;;  %v332_v3 = vadd.f32 1e-10, %v21_v2 }
   0x3   :  { %11 = vsyncpa [#allocation5], 0  ;;  %v29_v4 = vld [vmem:[%s1754_s2 + $0x38] sm:$0xff]  ;;  %v28_v5 = vld [vmem:[%s1754_s2 + $0x30] sm:$0xff]  ;;  %vm40_vm0 = vcmask 261120   ;;  %vm351_vm1 = vcmask 130048  }
   0x4   :  { %1329 = vlog2.f32 %v331_v1  ;;  %v27_v6 = vld [vmem:[%s1754_s2 + $0x28] sm:$0xff]  ;;  %v1442_v8 = vand.u32 4294901760, %v29_v4  ;;  %v1444_v9 = vand.u32 4294901760, %v28_v5  ;;  %v26_v11 = vld [vmem:[%s1754_s2 + $0x20] sm:$0xff]  ;;  %v38_v39 = vld [vmem:[%s1753_s1 + $0x10] sm:$0xff]  ;;  %s1398_s30 = smov [#allocation4]  }
   0x5   :  { %1331 = vlog2.f32 %v332_v3  ;;  %v1446_v10 = vand.u32 4294901760, %v27_v6  ;;  %v36_v12 = vld [vmem:[%s1753_s1] sm:$0xff]  ;;  %v37_v13 = vld [vmem:[%s1753_s1 + $0x8] sm:$0xff]  ;;  %v1457_v16 = vand.u32 4294901760, %v26_v11  ;;  %v48_v46 = vsel %vm40_vm0, %v38_v39, 0  ;;  %v39_v50 = vld [vmem:[%s1753_s1 + $0x18] sm:$0xff] }
   0x6   :  { %v42_v17 = vsel %vm40_vm0, %v36_v12, 0  ;;  %v45_v18 = vsel %vm40_vm0, %v37_v13, 0  ;;  %66 = vmatpush.msra.mxu0 %v1442_v8  ;;  %v119_v20 = vsub.f32 %v29_v4, %v1442_v8  ;;  %v125_v21 = vsub.f32 %v28_v5, %v1444_v9  ;;  %217 = vmatpush.msra.mxu3 %v1442_v8  ;;  %v18_v58 = vld [vmem:[%s1752_s0] sm:$0xff]  ;;  %v19_v61 = vld [vmem:[%s1752_s0 + $0x8] sm:$0xff]  ;;  %s1397_s0 = smov 16   ;;  %s1303_s5 = sshll.u32 %s1398_s30, 4  ;;  %s1304_s5 = int_to_ptr.vmem [resolvable:$true] %s1303_s5 }
   0x7   :  { %v131_v22 = vsub.f32 %v27_v6, %v1446_v10  ;;  %v1466_v24 = vand.u32 4294901760, %v42_v17  ;;  %v137_v25 = vsub.f32 %v26_v11, %v1457_v16  ;;  %v1469_v26 = vand.u32 4294901760, %v45_v18  ;;  %s1305_s8 = sshll.u32 %s1756_s4, 4  ;;  %s1399_s1 = smov 128   ;;  %s1306_s8 = int_to_ptr.hbm [resolvable:$true] %s1305_s8 }
   0x8   :  { %68 = vmatpush.msra.mxu0 %v1444_v9  ;;  %v120_v28 = vand.u32 4294901760, %v119_v20  ;;  %v126_v29 = vand.u32 4294901760, %v125_v21  ;;  %173 = vmatpush.msra.mxu2 %v119_v20  ;;  %v1495_v48 = vand.u32 4294901760, %v48_v46  ;;  %v51_v57 = vsel %vm40_vm0, %v39_v50, 0  ;;  %s1400_s9 = smov 8   ;;  %s1292_s13 = sshll.u32 %s1755_s3, 4  ;;  %s1293_s13 = int_to_ptr.hbm [resolvable:$true] %s1292_s13 }
   0x9   :  { %v132_v30 = vand.u32 4294901760, %v131_v22  ;;  %v1473_v32 = vsub.f32 %v42_v17, %v1466_v24  ;;  %v138_v33 = vand.u32 4294901760, %v137_v25  ;;  %v1476_v34 = vsub.f32 %v45_v18, %v1469_v26  ;;  %219 = vmatpush.msra.mxu3 %v1444_v9 }
   0xa   :  { %v1330_v7 = vpop.eup %1329  ;;  %v121_v36 = vsub.f32 %v119_v20, %v120_v28  ;;  %70 = vmatpush.msra.mxu0 %v1446_v10  ;;  %v127_v37 = vsub.f32 %v125_v21, %v126_v29  ;;  %176 = vmatpush.msra.mxu2 %v125_v21  ;;  %v1508_v54 = vsub.f32 %v48_v46, %v1495_v48  ;;  %v1523_v1 = vand.u32 4294901760, %v51_v57 }
   0xb   :  { %v1332_v14 = vpop.eup %1331  ;;  %v334_v15 = vmul.f32 0.6931472, %v1330_v7  ;;  %v133_v38 = vsub.f32 %v131_v22, %v132_v30  ;;  %v1484_v40 = vand.u32 4294901760, %v1473_v32  ;;  %221 = vmatpush.msra.mxu3 %v1446_v10  ;;  %v139_v43 = vsub.f32 %v137_v25, %v138_v33 }
   0xc   :  { %v336_v19 = vmul.f32 0.6931472, %v1332_v14  ;;  %v122_v41 = vand.u32 4294901760, %v121_v36  ;;  %v128_v42 = vand.u32 4294901760, %v127_v37  ;;  %72 = vmatpush.msra.mxu0 %v1457_v16  ;;  %179 = vmatpush.msra.mxu2 %v131_v22  ;;  %v1491_v45 = vand.u32 4294901760, %v1476_v34 }
   0xd   :  { %v337_v23 = vsub.f32 0.0, %v334_v15  ;;  %v76_v44 = vsub.f32 %v1473_v32, %v1484_v40  ;;  %223 = vmatpush.msra.mxu3 %v1457_v16  ;;  %v134_v47 = vand.u32 4294901760, %v133_v38  ;;  %v140_v51 = vand.u32 4294901760, %v139_v43 }
   0xe   :  { %v338_v27 = vsub.f32 0.0, %v336_v19  ;;  %264 = vmatpush.msrb.mxu0 %v120_v28  ;;  %123 = vmatpush.msra.mxu1 %v122_v41  ;;  %v84_v53 = vsub.f32 %v1476_v34, %v1491_v45  ;;  %v1521_v0 = vand.u32 4294901760, %v1508_v54  ;;  %v1533_v6 = vsub.f32 %v51_v57, %v1523_v1 }
   0xf   :  { %v339_v31 = vadd.f32 1e-10, %v337_v23  ;;  %182 = vmatpush.msra.mxu2 %v137_v25  ;;  %v1497_v49 = vand.u32 4294901760, %v76_v44  ;;  %227 = vmatmul.f32.vlgmr.msra.gmra.mxu3 %v1484_v40 }
  0x10   :  { %v340_v35 = vadd.f32 1e-10, %v338_v27  ;;  %185 = vmatmul.f32.vlgmr.msra.gmra.mxu2 %v1473_v32  ;;  %129 = vmatpush.msra.mxu1 %v128_v42  ;;  %v1518_v63 = vand.u32 4294901760, %v84_v53  ;;  %v92_v5 = vsub.f32 %v1508_v54, %v1521_v0 }
  0x11   :  { %1333 = vlog2.f32 %v339_v31  ;;  %268 = vmatpush.msrb.mxu0 %v126_v29 }
  0x12   :  { %1335 = vlog2.f32 %v340_v35  ;;  %78 = vmatmul.f32.vlgmr.msra.gmra.mxu0 %v1497_v49  ;;  %135 = vmatpush.msra.mxu1 %v134_v47  ;;  %v1539_v11 = vand.u32 4294901760, %v92_v5 }
  0x13   :  { %272 = vmatpush.msrb.mxu0 %v132_v30 }
  0x14   :  { %141 = vmatpush.msra.mxu1 %v140_v51 }
  0x15   :  { %276 = vmatpush.msrb.mxu0 %v138_v33  ;;  %143 = vmatmul.f32.vlgmr.msra.gmra.mxu1 %v1466_v24 }
  0x16   :  { %307 = vmatpush.msrb.mxu1 %v1442_v8 }
  0x17   :  { %v1334_v52 = vpop.eup %1333  ;;  %233 = vmatmul.f32.gmra.mxu3 %v1491_v45 }
  0x18   :  { %v1336_v55 = vpop.eup %1335  ;;  %v342_v56 = vmul.f32 0.6931472, %v1334_v52  ;;  %190 = vmatmul.f32.gmra.mxu2 %v1476_v34  ;;  %309 = vmatpush.msrb.mxu1 %v1444_v9  ;;  %v1542_v9 = vand.u32 4294901760, %v1533_v6 }
  0x19   :  { %v344_v59 = vmul.f32 0.6931472, %v1336_v55 }
  0x1a   :  { %v345_v60 = vsub.f32 0.0, %v342_v56  ;;  %86 = vmatmul.f32.gmra.mxu0 %v1518_v63  ;;  %311 = vmatpush.msrb.mxu1 %v1446_v10  ;;  %v100_v10 = vsub.f32 %v1533_v6, %v1542_v9 }
  0x1b   :  { %v346_v62 = vsub.f32 0.0, %v344_v59 }
  0x1c   :  { %v347_v2 = vadd.f32 %v345_v60, %v18_v58  ;;  %313 = vmatpush.msrb.mxu1 %v1457_v16  ;;  %v1551_v13 = vand.u32 4294901760, %v100_v10 }
  0x1d   :  { %v348_v4 = vadd.f32 %v346_v62, %v19_v61  ;;  %147 = vmatmul.f32.gmra.mxu1 %v1469_v26 }
  0x1e   :  { %v349_v3 = vmul.f32 3.3333333, %v347_v2 }
  0x1f   :  { %v350_v8 = vmul.f32 3.3333333, %v348_v4  ;;  %239 = vmatmul.f32.gmra.mxu3 %v1521_v0 }
  0x20   :  { %v352_v7 = vsel %vm351_vm1, %v349_v3, -inf  ;;  %195 = vmatmul.f32.gmra.mxu2 %v1508_v54 }
  0x21   :  { %353 = vmax.xlane.f32.xlu0 %v352_v7  ;;  %v355_v12 = vsel %vm351_vm1, %v350_v8, -inf }
  0x22   :  { %94 = vmatmul.f32.gmra.mxu0 %v1539_v11 }
  0x25   :  { %151 = vmatmul.f32.gmra.mxu1 %v1495_v48 }
  0x27   :  { %245 = vmatmul.f32.gmra.mxu3 %v1542_v9 }
  0x28   :  { %200 = vmatmul.f32.gmra.mxu2 %v1533_v6 }
  0x29   :  { %356 = vmax.xlane.f32.xlu0 %v355_v12 }
  0x2a   :  { %102 = vmatmul.f32.gmra.mxu0 %v1551_v13 }
  0x2d   :  { %155 = vmatmul.f32.gmra.mxu1 %v1523_v1 }
  0x32   :  { %278 = vmatmul.f32.vlgmr.msrb.gmra.mxu0 %v1466_v24 }
  0x35   :  { %315 = vmatmul.f32.vlgmr.msrb.gmra.mxu1 %v1466_v24 }
  0x3a   :  { %282 = vmatmul.f32.gmra.mxu0 %v1469_v26 }
  0x3d   :  { %319 = vmatmul.f32.gmra.mxu1 %v1469_v26 }
  0x42   :  { %286 = vmatmul.f32.gmra.mxu0 %v1495_v48 }
  0x45   :  { %323 = vmatmul.f32.gmra.mxu1 %v1495_v48 }
  0x4a   :  { %290 = vmatmul.f32.gmra.mxu0 %v1523_v1 }
  0x4d   :  { %327 = vmatmul.f32.gmra.mxu1 %v1523_v1 }
  0x8f   :  { %v79_v15 = vpop.f32.mrf.mxu0 }
  0x92   :  { %v144_v18 = vpop.f32.mrf.mxu1  ;;  %v228_v35 = vpop.f32.mrf.mxu3 }
  0x93   :  { %v186_v29 = vpop.f32.mrf.mxu2  ;;  %v145_v55 = vadd.f32 %v144_v18, %v79_v15 }
  0x94   :  { %v354_v14 = vpop.xlane.xlu0 %353 }
  0x95   :  { %v358_v16 = vsub.f32 %v349_v3, %v354_v14  ;;  %v187_v61 = vadd.f32 %v186_v29, %v145_v55 }
  0x97   :  { %v360_v17 = vmul.f32 1.442695, %v358_v16  ;;  %v87_v20 = vpop.f32.mrf.mxu0  ;;  %v229_v5 = vadd.f32 %v228_v35, %v187_v61 }
  0x99   :  { %1337 = vpow2.f32 %v360_v17 }
  0x9a   :  { %v148_v27 = vpop.f32.mrf.mxu1  ;;  %v234_v39 = vpop.f32.mrf.mxu3 }
  0x9b   :  { %v191_v37 = vpop.f32.mrf.mxu2  ;;  %v149_v51 = vadd.f32 %v148_v27, %v87_v20 }
  0x9c   :  { %v357_v19 = vpop.xlane.xlu0 %356 }
  0x9d   :  { %v359_v21 = vsub.f32 %v350_v8, %v357_v19  ;;  %v192_v58 = vadd.f32 %v191_v37, %v149_v51 }
  0x9f   :  { %v1565_v22 = vpop.eup %1337  ;;  %v362_v23 = vmul.f32 1.442695, %v359_v21  ;;  %v95_v28 = vpop.f32.mrf.mxu0  ;;  %v235_v3 = vadd.f32 %v234_v39, %v192_v58 }
  0xa0   :  { %v364_v25 = vsel %vm351_vm1, %v1565_v22, 0.0 }
  0xa1   :  { %1339 = vpow2.f32 %v362_v23  ;;  %365 = vadd.xlane.f32.xlu1 %v364_v25 }
  0xa2   :  { %v152_v33 = vpop.f32.mrf.mxu1  ;;  %v240_v46 = vpop.f32.mrf.mxu3 }
  0xa3   :  { %v196_v43 = vpop.f32.mrf.mxu2  ;;  %v153_v47 = vadd.f32 %v152_v33, %v95_v28 }
  0xa5   :  { %v197_v56 = vadd.f32 %v196_v43, %v153_v47 }
  0xa7   :  { %v1569_v30 = vpop.eup %1339  ;;  %v103_v36 = vpop.f32.mrf.mxu0  ;;  %v241_v62 = vadd.f32 %v240_v46, %v197_v56 }
  0xa8   :  { %v367_v31 = vsel %vm351_vm1, %v1569_v30, 0.0 }
  0xa9   :  { %368 = vadd.xlane.f32.xlu1 %v367_v31 }
  0xaa   :  { %v156_v38 = vpop.f32.mrf.mxu1  ;;  %v246_v60 = vpop.f32.mrf.mxu3 }
  0xab   :  { %v157_v52 = vadd.f32 %v156_v38, %v103_v36  ;;  %v201_v53 = vpop.f32.mrf.mxu2 }
  0xad   :  { %v202_v59 = vadd.f32 %v201_v53, %v157_v52 }
  0xaf   :  { %v279_v41 = vpop.f32.mrf.mxu0  ;;  %v247_v4 = vadd.f32 %v246_v60, %v202_v59 }
  0xb0   :  { %v280_v14 = vadd.f32 %v279_v41, %v229_v5 }
  0xb2   :  { %v316_v42 = vpop.f32.mrf.mxu1 }
  0xb3   :  { %v317_v18 = vadd.f32 %v316_v42, %v280_v14 }
  0xb5   :  { %v444_v27 = vand.u32 4294901760, %v317_v18 }
  0xb7   :  { %v283_v44 = vpop.f32.mrf.mxu0  ;;  %v510_v31 = vsub.f32 %v317_v18, %v444_v27 }
  0xb8   :  { %v284_v12 = vadd.f32 %v283_v44, %v235_v3 }
  0xb9   :  { %v511_v43 = vand.u32 4294901760, %v510_v31 }
  0xba   :  { %v320_v50 = vpop.f32.mrf.mxu1 }
  0xbb   :  { %v321_v19 = vadd.f32 %v320_v50, %v284_v12  ;;  %v512_v46 = vsub.f32 %v510_v31, %v511_v43 }
  0xbd   :  { %v442_v23 = vand.u32 4294901760, %v321_v19  ;;  %v513_v47 = vand.u32 4294901760, %v512_v46 }
  0xbf   :  { %v287_v57 = vpop.f32.mrf.mxu0  ;;  %v504_v29 = vsub.f32 %v321_v19, %v442_v23 }
  0xc0   :  { %v288_v7 = vadd.f32 %v287_v57, %v241_v62 }
  0xc1   :  { %v505_v39 = vand.u32 4294901760, %v504_v29 }
  0xc2   :  { %v324_v2 = vpop.f32.mrf.mxu1 }
  0xc3   :  { %v325_v16 = vadd.f32 %v324_v2, %v288_v7  ;;  %v506_v42 = vsub.f32 %v504_v29, %v505_v39 }
  0xc5   :  { %v440_v20 = vand.u32 4294901760, %v325_v16  ;;  %v507_v44 = vand.u32 4294901760, %v506_v42  ;;  %v24_v42 = vld [vmem:[%s1754_s2 + $0x10] sm:$0xff] }
  0xc7   :  { %v291_v8 = vpop.f32.mrf.mxu0  ;;  %v498_v28 = vsub.f32 %v325_v16, %v440_v20 }
  0xc8   :  { %v292_v10 = vadd.f32 %v291_v8, %v247_v4 }
  0xc9   :  { %v499_v35 = vand.u32 4294901760, %v498_v28 }
  0xca   :  { %v328_v17 = vpop.f32.mrf.mxu1 }
  0xcb   :  { %v329_v15 = vadd.f32 %v328_v17, %v292_v10  ;;  %v500_v37 = vsub.f32 %v498_v28, %v499_v35 }
  0xcd   :  { %v438_v21 = vand.u32 4294901760, %v329_v15  ;;  %v501_v41 = vand.u32 4294901760, %v500_v37 }
  0xcf   :  { %v492_v25 = vsub.f32 %v329_v15, %v438_v21  ;;  %439 = vmatpush.msrb.mxu2 %v438_v21  ;;  %590 = vmatpush.msra.mxu1 %v438_v21 }
  0xd1   :  { %441 = vmatpush.msrb.mxu2 %v440_v20  ;;  %546 = vmatpush.msra.mxu0 %v492_v25  ;;  %v493_v33 = vand.u32 4294901760, %v492_v25 }
  0xd2   :  { %592 = vmatpush.msra.mxu1 %v440_v20 }
  0xd3   :  { %443 = vmatpush.msrb.mxu2 %v442_v23  ;;  %549 = vmatpush.msra.mxu0 %v498_v28  ;;  %v494_v36 = vsub.f32 %v492_v25, %v493_v33 }
  0xd4   :  { %594 = vmatpush.msra.mxu1 %v442_v23 }
  0xd5   :  { %445 = vmatpush.msrb.mxu2 %v444_v27  ;;  %552 = vmatpush.msra.mxu0 %v504_v29  ;;  %v495_v38 = vand.u32 4294901760, %v494_v36  ;;  %v25_v36 = vld [vmem:[%s1754_s2 + $0x18] sm:$0xff] }
  0xd6   :  { %596 = vmatpush.msra.mxu1 %v444_v27  ;;  %v716_v37 = vand.u32 4294901760, %v25_v36 }
  0xd7   :  { %555 = vmatpush.msra.mxu0 %v510_v31  ;;  %637 = vmatpush.msra.mxu2 %v493_v33 }
  0xd8   :  { %496 = vmatpush.msrb.mxu3 %v495_v38  ;;  %v770_v38 = vsub.f32 %v25_v36, %v716_v37 }
  0xd9   :  { %641 = vmatpush.msra.mxu2 %v499_v35  ;;  %717 = vmatpush.msrb.mxu0 %v716_v37 }
  0xda   :  { %502 = vmatpush.msrb.mxu3 %v501_v41 }
  0xdb   :  { %645 = vmatpush.msra.mxu2 %v505_v39  ;;  %v771_v39 = vand.u32 4294901760, %v770_v38 }
  0xdc   :  { %508 = vmatpush.msrb.mxu3 %v507_v44 }
  0xdd   :  { %649 = vmatpush.msra.mxu2 %v511_v43  ;;  %v772_v41 = vsub.f32 %v770_v38, %v771_v39  ;;  %v718_v43 = vand.u32 4294901760, %v24_v42 }
  0xde   :  { %514 = vmatpush.msrb.mxu3 %v513_v47 }
  0xdf   :  { %v773_v44 = vand.u32 4294901760, %v772_v41  ;;  %719 = vmatpush.msrb.mxu0 %v718_v43  ;;  %v776_v46 = vsub.f32 %v24_v42, %v718_v43  ;;  %v32_v41 = vld [vmem:[%s1754_s2 + $0x50] sm:$0xff] }
  0xe0   :  { %680 = vmatpush.msra.mxu3 %v438_v21  ;;  %v1018_v42 = vand.u32 4294901760, %v32_v41 }
  0xe1   :  { %774 = vmatpush.msrb.mxu1 %v773_v44  ;;  %v777_v47 = vand.u32 4294901760, %v776_v46  ;;  %v31_v44 = vld [vmem:[%s1754_s2 + $0x48] sm:$0xff] }
  0xe2   :  { %682 = vmatpush.msra.mxu3 %v440_v20 }
  0xe4   :  { %684 = vmatpush.msra.mxu3 %v442_v23 }
  0xe6   :  { %686 = vmatpush.msra.mxu3 %v444_v27 }
 0x114   :  { %v366_v50 = vpop.xlane.xlu1 %365 }
 0x115   :  { %1341 = vrcp.f32 %v366_v50  ;;  %v381_v56 = vand.u32 2147483648, %v366_v50  ;;  %v379_v58 = vand.u32 2147483647, %v366_v50  ;;  %vm375_vm3 = vweird.f32 %v366_v50 }
 0x117   :  { %v382_v61 = vor.u32 1.1754944e-38, %v381_v56  ;;  %vm380_vm5 = vcmp.eq.f32.partialorder %v379_v58, 8.507059e+37  ;;  %v22_v58 = vld [vmem:[%s1754_s2] sm:$0xff] }
 0x11b   :  { %v1342_v51 = vpop.eup %1341 }
 0x11c   :  { %v371_v52 = vmul.f32 %v1342_v51, %v366_v50  ;;  %v369_v53 = vpop.xlane.xlu1 %368  ;;  %vm376_vm2 = vweird.f32 %v1342_v51  ;;  %v23_v50 = vld [vmem:[%s1754_s2 + $0x8] sm:$0xff] }
 0x11d   :  { %1343 = vrcp.f32 %v369_v53  ;;  %vm377_vm4 = vmor %vm375_vm3, %vm376_vm2  ;;  %v396_v7 = vand.u32 2147483648, %v369_v53  ;;  %v394_v12 = vand.u32 2147483647, %v369_v53  ;;  %vm390_vm7 = vweird.f32 %v369_v53 }
 0x11e   :  { %v372_v55 = vsub.f32 1.0, %v371_v52  ;;  %v720_v52 = vand.u32 4294901760, %v23_v50 }
 0x11f   :  { %v397_v19 = vor.u32 1.1754944e-38, %v396_v7  ;;  %vm395_vm9 = vcmp.eq.f32.partialorder %v394_v12, 8.507059e+37 }
 0x120   :  { %v373_v57 = vmul.f32 %v1342_v51, %v372_v55  ;;  %721 = vmatpush.msrb.mxu0 %v720_v52  ;;  %v782_v55 = vsub.f32 %v23_v50, %v720_v52  ;;  %v30_v50 = vld [vmem:[%s1754_s2 + $0x40] sm:$0xff] }
 0x122   :  { %v374_v59 = vadd.f32 %v1342_v51, %v373_v57  ;;  %v783_v56 = vand.u32 4294901760, %v782_v55 }
 0x123   :  { %v1344_v60 = vpop.eup %1343 }
 0x124   :  { %v386_v62 = vmul.f32 %v1344_v60, %v369_v53  ;;  %v378_v2 = vsel %vm377_vm4, %v1342_v51, %v374_v59  ;;  %vm391_vm6 = vweird.f32 %v1344_v60  ;;  %v778_v51 = vsub.f32 %v776_v46, %v777_v47 }
 0x125   :  { %v383_v3 = vsel %vm380_vm5, %v382_v61, %v378_v2  ;;  %vm392_vm8 = vmor %vm390_vm7, %vm391_vm6  ;;  %v784_v57 = vsub.f32 %v782_v55, %v783_v56 }
 0x126   :  { %v387_v4 = vsub.f32 1.0, %v386_v62  ;;  %v384_v5 = vmul.f32 %v1565_v22, %v383_v3  ;;  %v779_v53 = vand.u32 4294901760, %v778_v51 }
 0x127   :  { %v785_v59 = vand.u32 4294901760, %v784_v57 }
 0x128   :  { %v388_v8 = vmul.f32 %v1344_v60, %v387_v4  ;;  %406 = vrot.lane.b32.xlu2 %v384_v5, %s1397_s0  ;;  %400 = vst.msk [vmem:[#allocation4] sm:$0xff] %vm351_vm1, %v384_v5  ;;  %v402_v10 = vsel %vm351_vm1, %v384_v5, 0.0  ;;  %780 = vmatpush.msrb.mxu1 %v779_v53  ;;  %v1022_v53 = vand.u32 4294901760, %v30_v50 }
 0x129   :  { %v415_v14 = vsel %vm40_vm0, %v402_v10, 0 }
 0x12a   :  { %v389_v16 = vadd.f32 %v1344_v60, %v388_v8  ;;  %v1577_v17 = vand.u32 4294901760, %v415_v14  ;;  %786 = vmatpush.msrb.mxu1 %v785_v59 }
 0x12c   :  { %516 = vmatmul.f32.vlgmr.msrb.gmra.mxu3 %v1577_v17  ;;  %v447_v22 = vsub.f32 %v415_v14, %v1577_v17  ;;  %v393_v15 = vsel %vm392_vm8, %v1344_v60, %v389_v16  ;;  %v722_v60 = vand.u32 4294901760, %v22_v58 }
 0x12d   :  { %v398_v18 = vsel %vm395_vm9, %v397_v19, %v393_v15  ;;  %868 = vmatpush.msrb.mxu3 %v716_v37 }
 0x12e   :  { %558 = vmatmul.f32.vlgmr.msra.gmra.mxu0 %v447_v22  ;;  %v448_v20 = vand.u32 4294901760, %v447_v22  ;;  %v399_v21 = vmul.f32 %v1569_v30, %v398_v18  ;;  %v788_v62 = vsub.f32 %v22_v58, %v722_v60  ;;  %v1088_v58 = vsub.f32 %v30_v50, %v1022_v53 }
 0x12f   :  { %870 = vmatpush.msrb.mxu3 %v718_v43  ;;  %723 = vmatpush.msrb.mxu0 %v722_v60 }
 0x130   :  { %600 = vmatmul.f32.vlgmr.msra.gmra.mxu1 %v448_v20  ;;  %408 = vrot.lane.b32.xlu2 %v399_v21, %s1397_s0  ;;  %401 = vst.msk [vmem:[#allocation4 + $0x8] sm:$0xff] %vm351_vm1, %v399_v21  ;;  %v403_v23 = vsel %vm351_vm1, %v399_v21, 0.0  ;;  %v449_v25 = vsub.f32 %v447_v22, %v448_v20  ;;  %v789_v4 = vand.u32 4294901760, %v788_v62 }
 0x131   :  { %v418_v27 = vsel %vm40_vm0, %v403_v23, 0  ;;  %872 = vmatpush.msrb.mxu3 %v720_v52  ;;  %915 = vmatpush.msra.mxu0 %v771_v39  ;;  %1311 = dma.vmem_to_hbm [thread:$0]  %s1304_s5, 256, %s1306_s8, [#allocation5], %s1399_s1, %s1399_s1, %s1400_s9  }
 0x132   :  { %v450_v28 = vand.u32 4294901760, %v449_v25  ;;  %v1585_v29 = vand.u32 4294901760, %v418_v27  ;;  %v790_v7 = vsub.f32 %v788_v62, %v789_v4 }
 0x133   :  { %874 = vmatpush.msrb.mxu3 %v722_v60  ;;  %919 = vmatpush.msra.mxu0 %v777_v47  ;;  %v1020_v47 = vand.u32 4294901760, %v31_v44 }
 0x134   :  { %451 = vmatmul.f32.vlgmr.msrb.gmra.mxu2 %v450_v28  ;;  %520 = vmatmul.f32.gmra.mxu3 %v1585_v29  ;;  %v455_v31 = vsub.f32 %v418_v27, %v1585_v29  ;;  %v791_v12 = vand.u32 4294901760, %v790_v7 }
 0x135   :  { %824 = vmatpush.msrb.mxu2 %v770_v38  ;;  %923 = vmatpush.msra.mxu0 %v783_v56 }
 0x136   :  { %563 = vmatmul.f32.gmra.mxu0 %v455_v31  ;;  %v456_v33 = vand.u32 4294901760, %v455_v31  ;;  %792 = vmatpush.msrb.mxu1 %v791_v12 }
 0x137   :  { %827 = vmatpush.msrb.mxu2 %v776_v46  ;;  %927 = vmatpush.msra.mxu0 %v789_v4  ;;  %v1076_v46 = vsub.f32 %v32_v41, %v1018_v42 }
 0x138   :  { %606 = vmatmul.f32.gmra.mxu1 %v456_v33  ;;  %v457_v30 = vsub.f32 %v455_v31, %v456_v33 }
 0x139   :  { %830 = vmatpush.msrb.mxu2 %v782_v55  ;;  %958 = vmatpush.msra.mxu1 %v716_v37  ;;  %v1077_v51 = vand.u32 4294901760, %v1076_v46 }
 0x13a   :  { %v458_v35 = vand.u32 4294901760, %v457_v30 }
 0x13b   :  { %833 = vmatpush.msrb.mxu2 %v788_v62  ;;  %960 = vmatpush.msra.mxu1 %v718_v43  ;;  %v1078_v56 = vsub.f32 %v1076_v46, %v1077_v51 }
 0x13c   :  { %459 = vmatmul.f32.gmra.mxu2 %v458_v35 }
 0x13d   :  { %962 = vmatpush.msra.mxu1 %v720_v52  ;;  %v1082_v52 = vsub.f32 %v31_v44, %v1020_v47  ;;  %v1079_v62 = vand.u32 4294901760, %v1078_v56 }
 0x13f   :  { %964 = vmatpush.msra.mxu1 %v722_v60  ;;  %v1083_v57 = vand.u32 4294901760, %v1082_v52 }
 0x182   :  { %v407_v61 = vpop.permute.xlu2 %406 }
 0x183   :  { %v412_v2 = vsel %vm351_vm1, 0.0, %v407_v61 }
 0x184   :  { %v421_v3 = vsel %vm40_vm0, %v412_v2, 0  ;;  %v1084_v2 = vsub.f32 %v1082_v52, %v1083_v57 }
 0x185   :  { %v462_v5 = vand.u32 4294901760, %v421_v3 }
 0x187   :  { %v463_v8 = vsub.f32 %v421_v3, %v462_v5  ;;  %524 = vmatmul.f32.gmra.mxu3 %v462_v5  ;;  %v1089_v3 = vand.u32 4294901760, %v1088_v58 }
 0x189   :  { %568 = vmatmul.f32.gmra.mxu0 %v463_v8  ;;  %v464_v10 = vand.u32 4294901760, %v463_v8  ;;  %v1090_v7 = vsub.f32 %v1088_v58, %v1089_v3 }
 0x18a   :  { %v409_v14 = vpop.permute.xlu2 %408 }
 0x18b   :  { %v413_v16 = vsel %vm351_vm1, 0.0, %v409_v14  ;;  %612 = vmatmul.f32.gmra.mxu1 %v464_v10  ;;  %v465_v19 = vsub.f32 %v463_v8, %v464_v10  ;;  %v1091_v12 = vand.u32 4294901760, %v1090_v7 }
 0x18c   :  { %v424_v22 = vsel %vm40_vm0, %v413_v16, 0 }
 0x18d   :  { %v470_v15 = vand.u32 4294901760, %v424_v22  ;;  %v466_v18 = vand.u32 4294901760, %v465_v19 }
 0x18f   :  { %v471_v20 = vsub.f32 %v424_v22, %v470_v15  ;;  %467 = vmatmul.f32.gmra.mxu2 %v466_v18  ;;  %528 = vmatmul.f32.gmra.mxu3 %v470_v15 }
 0x191   :  { %573 = vmatmul.f32.gmra.mxu0 %v471_v20  ;;  %v472_v21 = vand.u32 4294901760, %v471_v20 }
 0x193   :  { %618 = vmatmul.f32.gmra.mxu1 %v472_v21  ;;  %v473_v23 = vsub.f32 %v471_v20, %v472_v21 }
 0x195   :  { %v474_v25 = vand.u32 4294901760, %v473_v23 }
 0x197   :  { %475 = vmatmul.f32.gmra.mxu2 %v474_v25  ;;  %688 = vmatmul.f32.vlgmr.msra.gmra.mxu3 %v1577_v17 }
 0x199   :  { %729 = vmatmul.f32.vlgmr.msrb.gmra.mxu0 %v1497_v49 }
 0x19b   :  { %794 = vmatmul.f32.vlgmr.msrb.gmra.mxu1 %v1466_v24 }
 0x19f   :  { %651 = vmatmul.f32.vlgmr.msra.gmra.mxu2 %v1577_v17  ;;  %692 = vmatmul.f32.gmra.mxu3 %v1585_v29 }
 0x1a1   :  { %737 = vmatmul.f32.gmra.mxu0 %v1518_v63 }
 0x1a3   :  { %798 = vmatmul.f32.gmra.mxu1 %v1469_v26 }
 0x1a7   :  { %655 = vmatmul.f32.gmra.mxu2 %v1585_v29  ;;  %696 = vmatmul.f32.gmra.mxu3 %v462_v5  ;;  %v33_v29 = vld [vmem:[%s1754_s2 + $0x58] sm:$0xff] }
 0x1a8   :  { %v1016_v31 = vand.u32 4294901760, %v33_v29 }
 0x1a9   :  { %745 = vmatmul.f32.gmra.mxu0 %v1539_v11 }
 0x1aa   :  { %1017 = vmatpush.msra.mxu2 %v1016_v31  ;;  %v1070_v33 = vsub.f32 %v33_v29, %v1016_v31  ;;  %1168 = vmatpush.msrb.mxu1 %v1016_v31 }
 0x1ab   :  { %802 = vmatmul.f32.gmra.mxu1 %v1495_v48 }
 0x1ac   :  { %v1071_v35 = vand.u32 4294901760, %v1070_v33  ;;  %1124 = vmatpush.msrb.mxu0 %v1070_v33  ;;  %1019 = vmatpush.msra.mxu2 %v1018_v42 }
 0x1ad   :  { %1170 = vmatpush.msrb.mxu1 %v1018_v42 }
 0x1ae   :  { %v1072_v39 = vsub.f32 %v1070_v33, %v1071_v35  ;;  %1021 = vmatpush.msra.mxu2 %v1020_v47  ;;  %1127 = vmatpush.msrb.mxu0 %v1076_v46 }
 0x1af   :  { %659 = vmatmul.f32.gmra.mxu2 %v462_v5  ;;  %700 = vmatmul.f32.gmra.mxu3 %v470_v15  ;;  %v1085_v5 = vand.u32 4294901760, %v1084_v2 }
 0x1b0   :  { %v1073_v43 = vand.u32 4294901760, %v1072_v39  ;;  %1172 = vmatpush.msrb.mxu1 %v1020_v47  ;;  %1130 = vmatpush.msrb.mxu0 %v1082_v52 }
 0x1b1   :  { %753 = vmatmul.f32.gmra.mxu0 %v1551_v13  ;;  %1023 = vmatpush.msra.mxu2 %v1022_v53 }
 0x1b2   :  { %1074 = vmatpush.msra.mxu3 %v1073_v43  ;;  %1174 = vmatpush.msrb.mxu1 %v1022_v53 }
 0x1b3   :  { %806 = vmatmul.f32.gmra.mxu1 %v1523_v1  ;;  %1133 = vmatpush.msrb.mxu0 %v1088_v58 }
 0x1b4   :  { %1080 = vmatpush.msra.mxu3 %v1079_v62 }
 0x1b6   :  { %1086 = vmatpush.msra.mxu3 %v1085_v5 }
 0x1b7   :  { %663 = vmatmul.f32.gmra.mxu2 %v470_v15  ;;  %878 = vmatmul.f32.vlgmr.msrb.gmra.mxu3 %v1484_v40 }
 0x1b8   :  { %1092 = vmatpush.msra.mxu3 %v1091_v12 }
 0x1b9   :  { %929 = vmatmul.f32.vlgmr.msra.gmra.mxu0 %v1466_v24 }
 0x1ba   :  { %1258 = vmatpush.msrb.mxu3 %v1016_v31 }
 0x1bb   :  { %966 = vmatmul.f32.vlgmr.msra.gmra.mxu1 %v1466_v24  ;;  %v1633_v24 = vpop.f32.mrf.mxu0 }
 0x1bc   :  { %1260 = vmatpush.msrb.mxu3 %v1018_v42 }
 0x1be   :  { %1262 = vmatpush.msrb.mxu3 %v1020_v47 }
 0x1bf   :  { %836 = vmatmul.f32.vlgmr.msrb.gmra.mxu2 %v1473_v32  ;;  %884 = vmatmul.f32.gmra.mxu3 %v1491_v45  ;;  %v517_v32 = vpop.f32.mrf.mxu3  ;;  %v452_v45 = vpop.f32.mrf.mxu2 }
 0x1c0   :  { %1215 = vmatpush.msrb.mxu2 %v1071_v35  ;;  %v518_v61 = vadd.f32 %v517_v32, %v452_v45  ;;  %1264 = vmatpush.msrb.mxu3 %v1022_v53 }
 0x1c1   :  { %933 = vmatmul.f32.gmra.mxu0 %v1469_v26 }
 0x1c2   :  { %1219 = vmatpush.msrb.mxu2 %v1077_v51  ;;  %v560_v8 = vadd.f32 %v1633_v24, %v518_v61 }
 0x1c3   :  { %970 = vmatmul.f32.gmra.mxu1 %v1469_v26  ;;  %v1635_v26 = vpop.f32.mrf.mxu1 }
 0x1c4   :  { %1223 = vmatpush.msrb.mxu2 %v1083_v57  ;;  %v602_v16 = vadd.f32 %v1635_v26, %v560_v8 }
 0x1c6   :  { %1227 = vmatpush.msrb.mxu2 %v1089_v3 }
 0x1c7   :  { %841 = vmatmul.f32.gmra.mxu2 %v1476_v34  ;;  %890 = vmatmul.f32.gmra.mxu3 %v1521_v0  ;;  %v1637_v34 = vpop.f32.mrf.mxu0  ;;  %v1647_v63 = vpop.f32.mrf.mxu2 }
 0x1c9   :  { %937 = vmatmul.f32.gmra.mxu0 %v1495_v48 }
 0x1cb   :  { %974 = vmatmul.f32.gmra.mxu1 %v1495_v48  ;;  %v1639_v40 = vpop.f32.mrf.mxu1  ;;  %v1641_v48 = vpop.f32.mrf.mxu3 }
 0x1cc   :  { %v522_v14 = vadd.f32 %v1641_v48, %v1647_v63 }
 0x1ce   :  { %v565_v20 = vadd.f32 %v1637_v34, %v522_v14 }
 0x1cf   :  { %846 = vmatmul.f32.gmra.mxu2 %v1508_v54  ;;  %896 = vmatmul.f32.gmra.mxu3 %v1542_v9 }
 0x1d0   :  { %v608_v24 = vadd.f32 %v1639_v40, %v565_v20 }
 0x1d1   :  { %941 = vmatmul.f32.gmra.mxu0 %v1523_v1 }
 0x1d3   :  { %978 = vmatmul.f32.gmra.mxu1 %v1523_v1 }
 0x1d7   :  { %851 = vmatmul.f32.gmra.mxu2 %v1533_v6 }
 0x206   :  { %v1643_v49 = vpop.f32.mrf.mxu0 }
 0x208   :  { %v1645_v54 = vpop.f32.mrf.mxu1 }
 0x20a   :  { %v1649_v0 = vpop.f32.mrf.mxu3 }
 0x20e   :  { %v1651_v1 = vpop.f32.mrf.mxu0 }
 0x210   :  { %v1653_v6 = vpop.f32.mrf.mxu1 }
 0x212   :  { %v1655_v11 = vpop.f32.mrf.mxu2  ;;  %v1657_v9 = vpop.f32.mrf.mxu3 }
 0x213   :  { %v526_v25 = vadd.f32 %v1649_v0, %v1655_v11 }
 0x215   :  { %v570_v63 = vadd.f32 %v1643_v49, %v526_v25 }
 0x216   :  { %v1659_v13 = vpop.f32.mrf.mxu0 }
 0x217   :  { %v614_v0 = vadd.f32 %v1645_v54, %v570_v63 }
 0x218   :  { %v1661_v17 = vpop.f32.mrf.mxu1 }
 0x21a   :  { %v1663_v27 = vpop.f32.mrf.mxu2  ;;  %v1665_v28 = vpop.f32.mrf.mxu3 }
 0x21e   :  { %v1670_v30 = vpop.f32.mrf.mxu0 }
 0x220   :  { %v1672_v36 = vpop.f32.mrf.mxu1 }
 0x222   :  { %v652_v37 = vpop.f32.mrf.mxu2  ;;  %v1674_v38 = vpop.f32.mrf.mxu3 }
 0x223   :  { %v653_v15 = vadd.f32 %v652_v37, %v602_v16 }
 0x225   :  { %v690_v21 = vadd.f32 %v1665_v28, %v653_v15  ;;  %v530_v28 = vadd.f32 %v1657_v9, %v1663_v27 }
 0x226   :  { %v1685_v55 = vpop.f32.mrf.mxu0 }
 0x227   :  { %v731_v26 = vadd.f32 %v1659_v13, %v690_v21  ;;  %v575_v39 = vadd.f32 %v1651_v1, %v530_v28 }
 0x228   :  { %v1687_v4 = vpop.f32.mrf.mxu1 }
 0x229   :  { %v796_v31 = vadd.f32 %v1661_v17, %v731_v26  ;;  %v1712_v17 = vld [vmem:[%s1754_s2 + $0x60] ss:$0 sm:$0xff] }
 0x22a   :  { %v656_v59 = vpop.f32.mrf.mxu2  ;;  %v697_v60 = vpop.f32.mrf.mxu3 }
 0x22b   :  { %v657_v45 = vadd.f32 %v656_v59, %v608_v24 }
 0x22d   :  { %v694_v34 = vadd.f32 %v1674_v38, %v657_v45 }
 0x22e   :  { %v754_v22 = vpop.f32.mrf.mxu0 }
 0x22f   :  { %v739_v40 = vadd.f32 %v1670_v30, %v694_v34  ;;  %v620_v30 = vadd.f32 %v1653_v6, %v575_v39 }
 0x230   :  { %v1693_v18 = vpop.f32.mrf.mxu1 }
 0x231   :  { %v800_v41 = vadd.f32 %v1672_v36, %v739_v40 }
 0x232   :  { %v660_v10 = vpop.f32.mrf.mxu2  ;;  %v701_v19 = vpop.f32.mrf.mxu3 }
 0x233   :  { %v661_v35 = vadd.f32 %v660_v10, %v614_v0 }
 0x235   :  { %v698_v9 = vadd.f32 %v697_v60, %v661_v35 }
 0x236   :  { %v930_v48 = vpop.f32.mrf.mxu0 }
 0x237   :  { %v747_v1 = vadd.f32 %v1685_v55, %v698_v9 }
 0x238   :  { %v967_v29 = vpop.f32.mrf.mxu1 }
 0x239   :  { %v804_v56 = vadd.f32 %v1687_v4, %v747_v1 }
 0x23a   :  { %v664_v23 = vpop.f32.mrf.mxu2  ;;  %v879_v32 = vpop.f32.mrf.mxu3 }
 0x23b   :  { %v665_v46 = vadd.f32 %v664_v23, %v620_v30  ;;  %v1328_v30 = vld [vmem:[%s1754_s2 + $0x68] ss:$0 sm:$0xff]  ;;  %s1401_s2 = smov [#allocation2]  }
 0x23c   :  { %s1290_s4 = sshll.u32 %s1401_s2, 4  ;;  %s1291_s4 = int_to_ptr.vmem [resolvable:$true] %s1290_s4 }
 0x23d   :  { %v702_v57 = vadd.f32 %v701_v19, %v665_v46 }
 0x23e   :  { %v934_v38 = vpop.f32.mrf.mxu0 }
 0x23f   :  { %v755_v3 = vadd.f32 %v754_v22, %v702_v57 }
 0x240   :  { %v971_v42 = vpop.f32.mrf.mxu1 }
 0x241   :  { %v808_v16 = vadd.f32 %v1693_v18, %v755_v3 }
 0x242   :  { %v837_v33 = vpop.f32.mrf.mxu2  ;;  %v885_v37 = vpop.f32.mrf.mxu3 }
 0x243   :  { %v838_v11 = vadd.f32 %v837_v33, %v796_v31 }
 0x245   :  { %v880_v13 = vadd.f32 %v879_v32, %v838_v11 }
 0x246   :  { %v938_v60 = vpop.f32.mrf.mxu0 }
 0x247   :  { %v931_v49 = vadd.f32 %v930_v48, %v880_v13 }
 0x248   :  { %v975_v2 = vpop.f32.mrf.mxu1 }
 0x249   :  { %v968_v27 = vadd.f32 %v967_v29, %v931_v49 }
 0x24a   :  { %v842_v54 = vpop.f32.mrf.mxu2  ;;  %v891_v36 = vpop.f32.mrf.mxu3 }
 0x24b   :  { %v983_v43 = vadd.f32 %v1712_v17, %v968_v27  ;;  %v843_v44 = vadd.f32 %v842_v54, %v800_v41 }
 0x24d   :  { %v987_v47 = vmax.f32 %v983_v43, 0.0  ;;  %v886_v50 = vadd.f32 %v885_v37, %v843_v44 }
 0x24e   :  { %v942_v25 = vpop.f32.mrf.mxu0 }
 0x24f   :  { %v993_v51 = vsel %vm40_vm0, %v987_v47, 0  ;;  %v935_v52 = vadd.f32 %v934_v38, %v886_v50 }
 0x250   :  { %v1719_v53 = vand.u32 4294901760, %v993_v51  ;;  %v979_v45 = vpop.f32.mrf.mxu1 }
 0x251   :  { %v972_v58 = vadd.f32 %v971_v42, %v935_v52 }
 0x252   :  { %v1025_v6 = vsub.f32 %v993_v51, %v1719_v53  ;;  %v847_v59 = vpop.f32.mrf.mxu2  ;;  %1094 = vmatmul.f32.vlgmr.msra.gmra.mxu3 %v1719_v53  ;;  %v897_v20 = vpop.f32.mrf.mxu3 }
 0x253   :  { %v984_v55 = vadd.f32 %v1712_v17, %v972_v58  ;;  %v848_v61 = vadd.f32 %v847_v59, %v804_v56 }
 0x254   :  { %1136 = vmatmul.f32.vlgmr.msrb.gmra.mxu0 %v1025_v6  ;;  %v1026_v62 = vand.u32 4294901760, %v1025_v6 }
 0x255   :  { %v988_v5 = vmax.f32 %v984_v55, 0.0  ;;  %v892_v7 = vadd.f32 %v891_v36, %v848_v61 }
 0x256   :  { %1178 = vmatmul.f32.vlgmr.msrb.gmra.mxu1 %v1026_v62  ;;  %v1027_v8 = vsub.f32 %v1025_v6, %v1026_v62 }
 0x257   :  { %v996_v4 = vsel %vm40_vm0, %v988_v5, 0  ;;  %v939_v12 = vadd.f32 %v938_v60, %v892_v7 }
 0x258   :  { %v1032_v10 = vand.u32 4294901760, %v996_v4  ;;  %v1028_v14 = vand.u32 4294901760, %v1027_v8 }
 0x259   :  { %v976_v19 = vadd.f32 %v975_v2, %v939_v12 }
 0x25a   :  { %v852_v15 = vpop.f32.mrf.mxu2  ;;  %1029 = vmatmul.f32.vlgmr.msra.gmra.mxu2 %v1028_v14  ;;  %1098 = vmatmul.f32.gmra.mxu3 %v1032_v10  ;;  %v1033_v21 = vsub.f32 %v996_v4, %v1032_v10 }
 0x25b   :  { %v985_v23 = vadd.f32 %v1712_v17, %v976_v19  ;;  %v853_v22 = vadd.f32 %v852_v15, %v808_v16 }
 0x25c   :  { %1141 = vmatmul.f32.gmra.mxu0 %v1033_v21  ;;  %v1034_v24 = vand.u32 4294901760, %v1033_v21 }
 0x25d   :  { %v989_v32 = vmax.f32 %v985_v23, 0.0  ;;  %v898_v26 = vadd.f32 %v897_v20, %v853_v22 }
 0x25e   :  { %1184 = vmatmul.f32.gmra.mxu1 %v1034_v24  ;;  %v1035_v48 = vsub.f32 %v1033_v21, %v1034_v24 }
 0x25f   :  { %v999_v63 = vsel %vm40_vm0, %v989_v32, 0  ;;  %v943_v18 = vadd.f32 %v942_v25, %v898_v26 }
 0x260   :  { %v1040_v29 = vand.u32 4294901760, %v999_v63  ;;  %v1036_v31 = vand.u32 4294901760, %v1035_v48 }
 0x261   :  { %v980_v34 = vadd.f32 %v979_v45, %v943_v18 }
 0x262   :  { %1037 = vmatmul.f32.gmra.mxu2 %v1036_v31  ;;  %1102 = vmatmul.f32.gmra.mxu3 %v1040_v29  ;;  %v1041_v33 = vsub.f32 %v999_v63, %v1040_v29 }
 0x263   :  { %v986_v28 = vadd.f32 %v1712_v17, %v980_v34 }
 0x264   :  { %1146 = vmatmul.f32.gmra.mxu0 %v1041_v33  ;;  %v1042_v0 = vand.u32 4294901760, %v1041_v33 }
 0x265   :  { %v990_v11 = vmax.f32 %v986_v28, 0.0 }
 0x266   :  { %1190 = vmatmul.f32.gmra.mxu1 %v1042_v0  ;;  %v1043_v40 = vsub.f32 %v1041_v33, %v1042_v0 }
 0x267   :  { %v1002_v35 = vsel %vm40_vm0, %v990_v11, 0 }
 0x268   :  { %v1048_v13 = vand.u32 4294901760, %v1002_v35  ;;  %v1044_v37 = vand.u32 4294901760, %v1043_v40 }
 0x26a   :  { %1045 = vmatmul.f32.gmra.mxu2 %v1044_v37  ;;  %1106 = vmatmul.f32.gmra.mxu3 %v1048_v13  ;;  %v1049_v39 = vsub.f32 %v1002_v35, %v1048_v13 }
 0x26c   :  { %1151 = vmatmul.f32.gmra.mxu0 %v1049_v39  ;;  %v1050_v49 = vand.u32 4294901760, %v1049_v39 }
 0x26e   :  { %1196 = vmatmul.f32.gmra.mxu1 %v1050_v49  ;;  %v1051_v38 = vsub.f32 %v1049_v39, %v1050_v49 }
 0x270   :  { %v1052_v41 = vand.u32 4294901760, %v1051_v38 }
 0x272   :  { %1053 = vmatmul.f32.gmra.mxu2 %v1052_v41  ;;  %1266 = vmatmul.f32.vlgmr.msrb.gmra.mxu3 %v1719_v53 }
 0x27a   :  { %1229 = vmatmul.f32.vlgmr.msrb.gmra.mxu2 %v1719_v53  ;;  %1270 = vmatmul.f32.gmra.mxu3 %v1032_v10 }
 0x282   :  { %1233 = vmatmul.f32.gmra.mxu2 %v1032_v10  ;;  %1274 = vmatmul.f32.gmra.mxu3 %v1040_v29 }
 0x28a   :  { %1237 = vmatmul.f32.gmra.mxu2 %v1040_v29  ;;  %1278 = vmatmul.f32.gmra.mxu3 %v1048_v13 }
 0x292   :  { %1241 = vmatmul.f32.gmra.mxu2 %v1048_v13 }
 0x2d1   :  { %v1137_v46 = vpop.f32.mrf.mxu0 }
 0x2d3   :  { %v1179_v50 = vpop.f32.mrf.mxu1 }
 0x2d5   :  { %v1095_v17 = vpop.f32.mrf.mxu3 }
 0x2d9   :  { %v1142_v56 = vpop.f32.mrf.mxu0 }
 0x2db   :  { %v1185_v60 = vpop.f32.mrf.mxu1 }
 0x2dd   :  { %v1030_v9 = vpop.f32.mrf.mxu2  ;;  %v1099_v27 = vpop.f32.mrf.mxu3 }
 0x2de   :  { %v1031_v1 = vadd.f32 %v1328_v30, %v1030_v9 }
 0x2e0   :  { %v1096_v47 = vadd.f32 %v1095_v17, %v1031_v1 }
 0x2e1   :  { %v1147_v7 = vpop.f32.mrf.mxu0 }
 0x2e2   :  { %v1138_v53 = vadd.f32 %v1137_v46, %v1096_v47 }
 0x2e3   :  { %v1191_v16 = vpop.f32.mrf.mxu1 }
 0x2e4   :  { %v1180_v58 = vadd.f32 %v1179_v50, %v1138_v53 }
 0x2e5   :  { %v1038_v54 = vpop.f32.mrf.mxu2  ;;  %v1103_v42 = vpop.f32.mrf.mxu3 }
 0x2e6   :  { %v1039_v52 = vadd.f32 %v1328_v30, %v1038_v54 }
 0x2e8   :  { %v1100_v57 = vadd.f32 %v1099_v27, %v1039_v52 }
 0x2e9   :  { %v1152_v22 = vpop.f32.mrf.mxu0 }
 0x2ea   :  { %v1143_v62 = vadd.f32 %v1142_v56, %v1100_v57 }
 0x2eb   :  { %v1197_v32 = vpop.f32.mrf.mxu1 }
 0x2ec   :  { %v1186_v5 = vadd.f32 %v1185_v60, %v1143_v62 }
 0x2ed   :  { %v1046_v43 = vpop.f32.mrf.mxu2  ;;  %v1107_v44 = vpop.f32.mrf.mxu3 }
 0x2ee   :  { %v1047_v55 = vadd.f32 %v1328_v30, %v1046_v43 }
 0x2f0   :  { %v1104_v3 = vadd.f32 %v1103_v42, %v1047_v55 }
 0x2f2   :  { %v1148_v14 = vadd.f32 %v1147_v7, %v1104_v3 }
 0x2f4   :  { %v1192_v15 = vadd.f32 %v1191_v16, %v1148_v14 }
 0x2f5   :  { %v1054_v51 = vpop.f32.mrf.mxu2  ;;  %v1267_v36 = vpop.f32.mrf.mxu3 }
 0x2f6   :  { %v1055_v12 = vadd.f32 %v1328_v30, %v1054_v51 }
 0x2f8   :  { %v1108_v19 = vadd.f32 %v1107_v44, %v1055_v12 }
 0x2fa   :  { %v1153_v24 = vadd.f32 %v1152_v22, %v1108_v19 }
 0x2fc   :  { %v1198_v26 = vadd.f32 %v1197_v32, %v1153_v24 }
 0x2fd   :  { %v1230_v6 = vpop.f32.mrf.mxu2  ;;  %v1271_v2 = vpop.f32.mrf.mxu3 }
 0x2fe   :  { %v1231_v59 = vadd.f32 %v1230_v6, %v1180_v58 }
 0x300   :  { %v1268_v61 = vadd.f32 %v1267_v36, %v1231_v59 }
 0x302   :  { %1282 = vst.msk [vmem:[#allocation2] sm:$0xff] %vm40_vm0, %v1268_v61 }
 0x305   :  { %v1234_v8 = vpop.f32.mrf.mxu2  ;;  %v1275_v20 = vpop.f32.mrf.mxu3 }
 0x306   :  { %v1235_v4 = vadd.f32 %v1234_v8, %v1186_v5 }
 0x308   :  { %v1272_v10 = vadd.f32 %v1271_v2, %v1235_v4 }
 0x30a   :  { %1283 = vst.msk [vmem:[#allocation2 + $0x8] sm:$0xff] %vm40_vm0, %v1272_v10 }
 0x30d   :  { %v1238_v21 = vpop.f32.mrf.mxu2  ;;  %v1279_v63 = vpop.f32.mrf.mxu3 }
 0x30e   :  { %v1239_v23 = vadd.f32 %v1238_v21, %v1192_v15 }
 0x310   :  { %v1276_v25 = vadd.f32 %v1275_v20, %v1239_v23 }
 0x312   :  { %1284 = vst.msk [vmem:[#allocation2 + $0x10] sm:$0xff] %vm40_vm0, %v1276_v25 }
 0x315   :  { %v1242_v45 = vpop.f32.mrf.mxu2 }
 0x316   :  { %v1243_v48 = vadd.f32 %v1242_v45, %v1198_v26 }
 0x318   :  { %v1280_v18 = vadd.f32 %v1279_v63, %v1243_v48 }
 0x31a   :  { %1285 = vst.msk [vmem:[#allocation2 + $0x18] sm:$0xff] %vm40_vm0, %v1280_v18 }
 0x31b   :  { %1298 = dma.vmem_to_hbm [thread:$0]  %s1291_s4, 512, %s1293_s13, [#allocation3], %s1399_s1, %s1399_s1, %s1400_s9  }
 0x31c   :  { %1393 = dma.done.wait [#allocation3], 512  }
 0x31d   :  { %1394 = vsyncadd [#allocation3], 4294966784 }
 0x31e   :  { %1395 = dma.done.wait [#allocation5], 256  }
 0x31f   :  { %1396 = vsyncadd [#allocation5], 4294967040 }
 0x320   :  { %1320 = vsyncpa [#allocation3], 1 }
 0x321   :  { %1321 = vsyncpa [#allocation5], 1 }

</bundles_post_ra>
